<compile_context>
chip_gen: v6e
topology: v6e:2x2x1
jax: 0.10.0
libtpu: 0.0.40
codegen_flags: <defaults>
</compile_context>

<pallas_src>
import math

import jax
import jax.numpy as jnp
from jax import lax
from jax.experimental import pallas as pl
from jax.experimental.pallas import tpu as pltpu


# ----------------------------------------------------------------------------
# Pallas kernel: whole LSTM recurrence + in-kernel gather, single invocation.
#   xproj_ref : (S, B, 4*nh) f32   precomputed x@W_ih^T + (b_ih+b_hh), time-major
#   whh_ref   : (nh, 4*nh)   f32   W_hh^T
#   tcol_ref  : (B, 1)       i32   t_idx[i]  = ((ls[i]-1)*B + i) % S
#   bsel_ref  : (B, B)       f32   one-hot rows: bsel[i, b_idx[i]] = 1
#   out_ref   : (B, nh)      f32   gathered final hidden states
# ----------------------------------------------------------------------------
def _jet_lstm_kernel(xproj_ref, whh_ref, tcol_ref, bsel_ref, out_ref):
    S, B, _ = xproj_ref.shape
    nh = whh_ref.shape[0]

    whh = whh_ref[...]          # (nh, 4*nh), resident for the whole loop
    bsel = bsel_ref[...]        # (B, B)
    tcol = tcol_ref[...]        # (B, 1) int32

    def step(t, carry):
        h, c, acc = carry
        # Recurrent gate pre-activations: hoisted input term + h @ W_hh^T.
        gates = xproj_ref[t] + jnp.dot(h, whh, preferred_element_type=jnp.float32)
        # PyTorch LSTM gate order: i, f, g, o.
        i_g = jax.nn.sigmoid(gates[:, 0 * nh:1 * nh])
        f_g = jax.nn.sigmoid(gates[:, 1 * nh:2 * nh])
        g_g = jnp.tanh(gates[:, 2 * nh:3 * nh])
        o_g = jax.nn.sigmoid(gates[:, 3 * nh:4 * nh])
        c = f_g * c + i_g * g_g
        h = o_g * jnp.tanh(c)
        # In-kernel gather: picked[i] = h[b_idx[i]] via one-hot matmul (no
        # dynamic indexing), committed on the step where t == t_idx[i].
        picked = jnp.dot(bsel, h, preferred_element_type=jnp.float32)   # (B, nh)
        acc = jnp.where(tcol == t, picked, acc)
        return h, c, acc

    zeros = jnp.zeros((B, nh), jnp.float32)
    _, _, acc = lax.fori_loop(0, S, step, (zeros, zeros, zeros), unroll=True)
    out_ref[...] = acc.astype(out_ref.dtype)


# ----------------------------------------------------------------------------
# jetRNN.forward equivalent.  o: (B, nj, S) — same layout as the PyTorch input.
# ----------------------------------------------------------------------------
def jet_rnn_forward(o, params):
    w_ih, w_hh, b_ih, b_hh = params
    B, nj, S = o.shape
    nh4 = w_ih.shape[0]
    nh = nh4 // 4

    # ls = number of non-zero entries of feature 1 along the sequence axis.
    ls = jnp.sum(o[:, 1, :] != 0, axis=1).astype(jnp.int32)
    ls = ls + (ls == 0).astype(jnp.int32)

    # Original module's gather: hs.view(B*S, nh)[(l-1)*B + i]
    #   == hs[idx // S, idx % S]  with hs batch-first (B, S, nh).
    idx = (ls - 1) * B + jnp.arange(B, dtype=jnp.int32)
    b_idx = idx // S
    t_idx = idx % S
    tcol = t_idx.reshape(B, 1)
    bsel = (b_idx[:, None] == jnp.arange(B, dtype=jnp.int32)[None, :]).astype(jnp.float32)

    # Hoisted input projection for ALL timesteps, directly on the (B, nj, S)
    # layout (no wrapper transposes): (S, B, 4*nh) = o . W_ih^T  + bias.
    xproj = jnp.einsum('bjs,gj->sbg', o, w_ih) + (b_ih + b_hh)
    whh_t = jnp.transpose(w_hh)                     # (nh, 4*nh)
    # TODO(synk): on v6e/v7x, weights/xproj could be bf16 (f32 accumulation)
    # to halve VMEM/HBM traffic; kept f32 here to match the PyTorch reference.

    out = pl.pallas_call(
        _jet_lstm_kernel,
        out_shape=jax.ShapeDtypeStruct((B, nh), o.dtype),
        in_specs=[
            pl.BlockSpec(memory_space=pltpu.MemorySpace.VMEM),  # xproj
            pl.BlockSpec(memory_space=pltpu.MemorySpace.VMEM),  # W_hh^T
            pl.BlockSpec(memory_space=pltpu.MemorySpace.VMEM),  # t_idx column
            pl.BlockSpec(memory_space=pltpu.MemorySpace.VMEM),  # batch one-hot
        ],
        out_specs=pl.BlockSpec(memory_space=pltpu.MemorySpace.VMEM),
    )(xproj, whh_t, tcol, bsel)
    return out


# ----------------------------------------------------------------------------
# Pure-JAX reference (lax.scan LSTM) for correctness checking.
# ----------------------------------------------------------------------------
def jet_rnn_forward_ref(o, params):
    w_ih, w_hh, b_ih, b_hh = params
    B, nj, S = o.shape
    nh = w_hh.shape[1]

    ls = jnp.sum(o[:, 1, :] != 0, axis=1).astype(jnp.int32)
    ls = ls + (ls == 0).astype(jnp.int32)

    js = jnp.transpose(o, (0, 2, 1))            # (B, S, nj)

    def step(carry, x_t):
        h, c = carry
        gates = x_t @ w_ih.T + h @ w_hh.T + b_ih + b_hh
        i, f, g, og = jnp.split(gates, 4, axis=-1)
        i = jax.nn.sigmoid(i)
        f = jax.nn.sigmoid(f)
        g = jnp.tanh(g)
        og = jax.nn.sigmoid(og)
        c = f * c + i * g
        h = og * jnp.tanh(c)
        return (h, c), h

    h0 = jnp.zeros((B, nh), jnp.float32)
    c0 = jnp.zeros((B, nh), jnp.float32)
    _, hs_tm = lax.scan(step, (h0, c0), jnp.transpose(js, (1, 0, 2)))
    hs = jnp.transpose(hs_tm, (1, 0, 2))        # (B, S, nh)

    hs_flat = hs.reshape(B * S, nh)
    idxs = (ls - 1) * B + jnp.arange(B, dtype=jnp.int32)
    return jnp.take(hs_flat, idxs, axis=0)


# ----------------------------------------------------------------------------
# Deterministic parameter init (PyTorch LSTM default: U(-1/sqrt(nh), 1/sqrt(nh)))
# ----------------------------------------------------------------------------
def init_params(key, nj, nh):
    k = 1.0 / math.sqrt(nh)
    k1, k2, k3, k4 = jax.random.split(key, 4)
    w_ih = jax.random.uniform(k1, (4 * nh, nj), jnp.float32, -k, k)
    w_hh = jax.random.uniform(k2, (4 * nh, nh), jnp.float32, -k, k)
    b_ih = jax.random.uniform(k3, (4 * nh,), jnp.float32, -k, k)
    b_hh = jax.random.uniform(k4, (4 * nh,), jnp.float32, -k, k)
    return w_ih, w_hh, b_ih, b_hh


if __name__ == "__main__":
    B, nj, S, nh = 2, 4, 8, 32   # jetFeatures=4, hiddenFeatures=32

    key = jax.random.PRNGKey(0)
    kp, kx = jax.random.split(key)
    params = init_params(kp, nj, nh)

    # Input o: (B, nj, S).  Zero-pad the tail of batch element 1 so the
    # length-based gather is exercised (ls[1] < S, cross-batch index path hit).
    o = jax.random.normal(kx, (B, nj, S), jnp.float32)
    o = o.at[1, :, 5:].set(0.0)

    out = jax.jit(jet_rnn_forward)(o, params)
    out = jax.block_until_ready(out)

    ref = jet_rnn_forward_ref(o, params)
    assert out.shape == (B, nh)
    assert jnp.allclose(out, ref, atol=1e-4, rtol=1e-4), "mismatch vs. reference"

    print("KERNEL_OK")
</pallas_src>

<mosaic_0001>
module attributes {stable_mosaic.version = 11 : i64} {
  func.func @_jet_lstm_kernel(%arg0: memref<8x2x128xf32, #tpu.memory_space<vmem>>, %arg1: memref<32x128xf32, #tpu.memory_space<vmem>>, %arg2: memref<2x1xi32, #tpu.memory_space<vmem>>, %arg3: memref<2x2xf32, #tpu.memory_space<vmem>>, %arg4: memref<2x32xf32, #tpu.memory_space<vmem>>) attributes {dimension_semantics = [], scalar_prefetch = 0 : i64, scratch_operands = 0 : i64, tpu.core_type = #tpu.core_type<tc>} {
    %c0 = arith.constant 0 : index
    %c0_0 = arith.constant 0 : index
    %0 = vector.load %arg1[%c0, %c0_0] : memref<32x128xf32, #tpu.memory_space<vmem>>, vector<32x128xf32>
    %c0_1 = arith.constant 0 : index
    %c0_2 = arith.constant 0 : index
    %1 = vector.load %arg3[%c0_1, %c0_2] : memref<2x2xf32, #tpu.memory_space<vmem>>, vector<2x2xf32>
    %c0_3 = arith.constant 0 : index
    %c0_4 = arith.constant 0 : index
    %2 = vector.load %arg2[%c0_3, %c0_4] : memref<2x1xi32, #tpu.memory_space<vmem>>, vector<2x1xi32>
    %cst = arith.constant 0.000000e+00 : f32
    %3 = vector.broadcast %cst : f32 to vector<2x32xf32>
    %c0_i32 = arith.constant 0 : i32
    %4 = arith.index_cast %c0_i32 : i32 to index
    %c0_5 = arith.constant 0 : index
    %c0_6 = arith.constant 0 : index
    %5 = vector.load %arg0[%4, %c0_5, %c0_6] : memref<8x2x128xf32, #tpu.memory_space<vmem>>, vector<1x2x128xf32>
    %6 = vector.shape_cast %5 : vector<1x2x128xf32> to vector<2x128xf32>
    %cst_7 = arith.constant dense<0.000000e+00> : vector<2x128xf32>
    %7 = tpu.matmul %3, %0, %cst_7 {dimension_numbers = #tpu.dot_dimension_numbers<[1], [0], [0], [1], [0, 0, 1, 1], [], []>} : vector<2x32xf32>, vector<32x128xf32>, vector<2x128xf32> -> vector<2x128xf32>
    %8 = arith.addf %6, %7 : vector<2x128xf32>
    %9 = vector.extract_strided_slice %8 {offsets = [0, 0], sizes = [2, 32], strides = [1, 1]} : vector<2x128xf32> to vector<2x32xf32>
    %10 = arith.negf %9 : vector<2x32xf32>
    %11 = math.exp %10 : vector<2x32xf32>
    %cst_8 = arith.constant 1.000000e+00 : f32
    %12 = vector.broadcast %cst_8 : f32 to vector<2x32xf32>
    %13 = arith.addf %12, %11 : vector<2x32xf32>
    %14 = arith.divf %12, %13 : vector<2x32xf32>
    %15 = vector.extract_strided_slice %8 {offsets = [0, 32], sizes = [2, 32], strides = [1, 1]} : vector<2x128xf32> to vector<2x32xf32>
    %16 = arith.negf %15 : vector<2x32xf32>
    %17 = math.exp %16 : vector<2x32xf32>
    %cst_9 = arith.constant 1.000000e+00 : f32
    %18 = vector.broadcast %cst_9 : f32 to vector<2x32xf32>
    %19 = arith.addf %18, %17 : vector<2x32xf32>
    %20 = arith.divf %18, %19 : vector<2x32xf32>
    %21 = vector.extract_strided_slice %8 {offsets = [0, 64], sizes = [2, 32], strides = [1, 1]} : vector<2x128xf32> to vector<2x32xf32>
    %22 = math.tanh %21 : vector<2x32xf32>
    %23 = vector.extract_strided_slice %8 {offsets = [0, 96], sizes = [2, 32], strides = [1, 1]} : vector<2x128xf32> to vector<2x32xf32>
    %24 = arith.negf %23 : vector<2x32xf32>
    %25 = math.exp %24 : vector<2x32xf32>
    %cst_10 = arith.constant 1.000000e+00 : f32
    %26 = vector.broadcast %cst_10 : f32 to vector<2x32xf32>
    %27 = arith.addf %26, %25 : vector<2x32xf32>
    %28 = arith.divf %26, %27 : vector<2x32xf32>
    %29 = arith.mulf %20, %3 : vector<2x32xf32>
    %30 = arith.mulf %14, %22 : vector<2x32xf32>
    %31 = arith.addf %29, %30 : vector<2x32xf32>
    %32 = math.tanh %31 : vector<2x32xf32>
    %33 = arith.mulf %28, %32 : vector<2x32xf32>
    %cst_11 = arith.constant dense<0.000000e+00> : vector<2x32xf32>
    %34 = tpu.matmul %1, %33, %cst_11 {dimension_numbers = #tpu.dot_dimension_numbers<[1], [0], [0], [1], [0, 0, 1, 1], [], []>} : vector<2x2xf32>, vector<2x32xf32>, vector<2x32xf32> -> vector<2x32xf32>
    %35 = vector.broadcast %c0_i32 : i32 to vector<2x1xi32>
    %36 = arith.cmpi eq, %2, %35 : vector<2x1xi32>
    %37 = vector.shape_cast %36 : vector<2x1xi1> to vector<2x1xi1>
    %38 = vector.broadcast %37 : vector<2x1xi1> to vector<2x32xi1>
    %39 = arith.select %38, %34, %3 : vector<2x32xi1>, vector<2x32xf32>
    %c1_i32 = arith.constant 1 : i32
    %40 = arith.index_cast %c1_i32 : i32 to index
    %c0_12 = arith.constant 0 : index
    %c0_13 = arith.constant 0 : index
    %41 = vector.load %arg0[%40, %c0_12, %c0_13] : memref<8x2x128xf32, #tpu.memory_space<vmem>>, vector<1x2x128xf32>
    %42 = vector.shape_cast %41 : vector<1x2x128xf32> to vector<2x128xf32>
    %cst_14 = arith.constant dense<0.000000e+00> : vector<2x128xf32>
    %43 = tpu.matmul %33, %0, %cst_14 {dimension_numbers = #tpu.dot_dimension_numbers<[1], [0], [0], [1], [0, 0, 1, 1], [], []>} : vector<2x32xf32>, vector<32x128xf32>, vector<2x128xf32> -> vector<2x128xf32>
    %44 = arith.addf %42, %43 : vector<2x128xf32>
    %45 = vector.extract_strided_slice %44 {offsets = [0, 0], sizes = [2, 32], strides = [1, 1]} : vector<2x128xf32> to vector<2x32xf32>
    %46 = arith.negf %45 : vector<2x32xf32>
    %47 = math.exp %46 : vector<2x32xf32>
    %cst_15 = arith.constant 1.000000e+00 : f32
    %48 = vector.broadcast %cst_15 : f32 to vector<2x32xf32>
    %49 = arith.addf %48, %47 : vector<2x32xf32>
    %50 = arith.divf %48, %49 : vector<2x32xf32>
    %51 = vector.extract_strided_slice %44 {offsets = [0, 32], sizes = [2, 32], strides = [1, 1]} : vector<2x128xf32> to vector<2x32xf32>
    %52 = arith.negf %51 : vector<2x32xf32>
    %53 = math.exp %52 : vector<2x32xf32>
    %cst_16 = arith.constant 1.000000e+00 : f32
    %54 = vector.broadcast %cst_16 : f32 to vector<2x32xf32>
    %55 = arith.addf %54, %53 : vector<2x32xf32>
    %56 = arith.divf %54, %55 : vector<2x32xf32>
    %57 = vector.extract_strided_slice %44 {offsets = [0, 64], sizes = [2, 32], strides = [1, 1]} : vector<2x128xf32> to vector<2x32xf32>
    %58 = math.tanh %57 : vector<2x32xf32>
    %59 = vector.extract_strided_slice %44 {offsets = [0, 96], sizes = [2, 32], strides = [1, 1]} : vector<2x128xf32> to vector<2x32xf32>
    %60 = arith.negf %59 : vector<2x32xf32>
    %61 = math.exp %60 : vector<2x32xf32>
    %cst_17 = arith.constant 1.000000e+00 : f32
    %62 = vector.broadcast %cst_17 : f32 to vector<2x32xf32>
    %63 = arith.addf %62, %61 : vector<2x32xf32>
    %64 = arith.divf %62, %63 : vector<2x32xf32>
    %65 = arith.mulf %56, %31 : vector<2x32xf32>
    %66 = arith.mulf %50, %58 : vector<2x32xf32>
    %67 = arith.addf %65, %66 : vector<2x32xf32>
    %68 = math.tanh %67 : vector<2x32xf32>
    %69 = arith.mulf %64, %68 : vector<2x32xf32>
    %cst_18 = arith.constant dense<0.000000e+00> : vector<2x32xf32>
    %70 = tpu.matmul %1, %69, %cst_18 {dimension_numbers = #tpu.dot_dimension_numbers<[1], [0], [0], [1], [0, 0, 1, 1], [], []>} : vector<2x2xf32>, vector<2x32xf32>, vector<2x32xf32> -> vector<2x32xf32>
    %71 = vector.broadcast %c1_i32 : i32 to vector<2x1xi32>
    %72 = arith.cmpi eq, %2, %71 : vector<2x1xi32>
    %73 = vector.shape_cast %72 : vector<2x1xi1> to vector<2x1xi1>
    %74 = vector.broadcast %73 : vector<2x1xi1> to vector<2x32xi1>
    %75 = arith.select %74, %70, %39 : vector<2x32xi1>, vector<2x32xf32>
    %c2_i32 = arith.constant 2 : i32
    %76 = arith.index_cast %c2_i32 : i32 to index
    %c0_19 = arith.constant 0 : index
    %c0_20 = arith.constant 0 : index
    %77 = vector.load %arg0[%76, %c0_19, %c0_20] : memref<8x2x128xf32, #tpu.memory_space<vmem>>, vector<1x2x128xf32>
    %78 = vector.shape_cast %77 : vector<1x2x128xf32> to vector<2x128xf32>
    %cst_21 = arith.constant dense<0.000000e+00> : vector<2x128xf32>
    %79 = tpu.matmul %69, %0, %cst_21 {dimension_numbers = #tpu.dot_dimension_numbers<[1], [0], [0], [1], [0, 0, 1, 1], [], []>} : vector<2x32xf32>, vector<32x128xf32>, vector<2x128xf32> -> vector<2x128xf32>
    %80 = arith.addf %78, %79 : vector<2x128xf32>
    %81 = vector.extract_strided_slice %80 {offsets = [0, 0], sizes = [2, 32], strides = [1, 1]} : vector<2x128xf32> to vector<2x32xf32>
    %82 = arith.negf %81 : vector<2x32xf32>
    %83 = math.exp %82 : vector<2x32xf32>
    %cst_22 = arith.constant 1.000000e+00 : f32
    %84 = vector.broadcast %cst_22 : f32 to vector<2x32xf32>
    %85 = arith.addf %84, %83 : vector<2x32xf32>
    %86 = arith.divf %84, %85 : vector<2x32xf32>
    %87 = vector.extract_strided_slice %80 {offsets = [0, 32], sizes = [2, 32], strides = [1, 1]} : vector<2x128xf32> to vector<2x32xf32>
    %88 = arith.negf %87 : vector<2x32xf32>
    %89 = math.exp %88 : vector<2x32xf32>
    %cst_23 = arith.constant 1.000000e+00 : f32
    %90 = vector.broadcast %cst_23 : f32 to vector<2x32xf32>
    %91 = arith.addf %90, %89 : vector<2x32xf32>
    %92 = arith.divf %90, %91 : vector<2x32xf32>
    %93 = vector.extract_strided_slice %80 {offsets = [0, 64], sizes = [2, 32], strides = [1, 1]} : vector<2x128xf32> to vector<2x32xf32>
    %94 = math.tanh %93 : vector<2x32xf32>
    %95 = vector.extract_strided_slice %80 {offsets = [0, 96], sizes = [2, 32], strides = [1, 1]} : vector<2x128xf32> to vector<2x32xf32>
    %96 = arith.negf %95 : vector<2x32xf32>
    %97 = math.exp %96 : vector<2x32xf32>
    %cst_24 = arith.constant 1.000000e+00 : f32
    %98 = vector.broadcast %cst_24 : f32 to vector<2x32xf32>
    %99 = arith.addf %98, %97 : vector<2x32xf32>
    %100 = arith.divf %98, %99 : vector<2x32xf32>
    %101 = arith.mulf %92, %67 : vector<2x32xf32>
    %102 = arith.mulf %86, %94 : vector<2x32xf32>
    %103 = arith.addf %101, %102 : vector<2x32xf32>
    %104 = math.tanh %103 : vector<2x32xf32>
    %105 = arith.mulf %100, %104 : vector<2x32xf32>
    %cst_25 = arith.constant dense<0.000000e+00> : vector<2x32xf32>
    %106 = tpu.matmul %1, %105, %cst_25 {dimension_numbers = #tpu.dot_dimension_numbers<[1], [0], [0], [1], [0, 0, 1, 1], [], []>} : vector<2x2xf32>, vector<2x32xf32>, vector<2x32xf32> -> vector<2x32xf32>
    %107 = vector.broadcast %c2_i32 : i32 to vector<2x1xi32>
    %108 = arith.cmpi eq, %2, %107 : vector<2x1xi32>
    %109 = vector.shape_cast %108 : vector<2x1xi1> to vector<2x1xi1>
    %110 = vector.broadcast %109 : vector<2x1xi1> to vector<2x32xi1>
    %111 = arith.select %110, %106, %75 : vector<2x32xi1>, vector<2x32xf32>
    %c3_i32 = arith.constant 3 : i32
    %112 = arith.index_cast %c3_i32 : i32 to index
    %c0_26 = arith.constant 0 : index
    %c0_27 = arith.constant 0 : index
    %113 = vector.load %arg0[%112, %c0_26, %c0_27] : memref<8x2x128xf32, #tpu.memory_space<vmem>>, vector<1x2x128xf32>
    %114 = vector.shape_cast %113 : vector<1x2x128xf32> to vector<2x128xf32>
    %cst_28 = arith.constant dense<0.000000e+00> : vector<2x128xf32>
    %115 = tpu.matmul %105, %0, %cst_28 {dimension_numbers = #tpu.dot_dimension_numbers<[1], [0], [0], [1], [0, 0, 1, 1], [], []>} : vector<2x32xf32>, vector<32x128xf32>, vector<2x128xf32> -> vector<2x128xf32>
    %116 = arith.addf %114, %115 : vector<2x128xf32>
    %117 = vector.extract_strided_slice %116 {offsets = [0, 0], sizes = [2, 32], strides = [1, 1]} : vector<2x128xf32> to vector<2x32xf32>
    %118 = arith.negf %117 : vector<2x32xf32>
    %119 = math.exp %118 : vector<2x32xf32>
    %cst_29 = arith.constant 1.000000e+00 : f32
    %120 = vector.broadcast %cst_29 : f32 to vector<2x32xf32>
    %121 = arith.addf %120, %119 : vector<2x32xf32>
    %122 = arith.divf %120, %121 : vector<2x32xf32>
    %123 = vector.extract_strided_slice %116 {offsets = [0, 32], sizes = [2, 32], strides = [1, 1]} : vector<2x128xf32> to vector<2x32xf32>
    %124 = arith.negf %123 : vector<2x32xf32>
    %125 = math.exp %124 : vector<2x32xf32>
    %cst_30 = arith.constant 1.000000e+00 : f32
    %126 = vector.broadcast %cst_30 : f32 to vector<2x32xf32>
    %127 = arith.addf %126, %125 : vector<2x32xf32>
    %128 = arith.divf %126, %127 : vector<2x32xf32>
    %129 = vector.extract_strided_slice %116 {offsets = [0, 64], sizes = [2, 32], strides = [1, 1]} : vector<2x128xf32> to vector<2x32xf32>
    %130 = math.tanh %129 : vector<2x32xf32>
    %131 = vector.extract_strided_slice %116 {offsets = [0, 96], sizes = [2, 32], strides = [1, 1]} : vector<2x128xf32> to vector<2x32xf32>
    %132 = arith.negf %131 : vector<2x32xf32>
    %133 = math.exp %132 : vector<2x32xf32>
    %cst_31 = arith.constant 1.000000e+00 : f32
    %134 = vector.broadcast %cst_31 : f32 to vector<2x32xf32>
    %135 = arith.addf %134, %133 : vector<2x32xf32>
    %136 = arith.divf %134, %135 : vector<2x32xf32>
    %137 = arith.mulf %128, %103 : vector<2x32xf32>
    %138 = arith.mulf %122, %130 : vector<2x32xf32>
    %139 = arith.addf %137, %138 : vector<2x32xf32>
    %140 = math.tanh %139 : vector<2x32xf32>
    %141 = arith.mulf %136, %140 : vector<2x32xf32>
    %cst_32 = arith.constant dense<0.000000e+00> : vector<2x32xf32>
    %142 = tpu.matmul %1, %141, %cst_32 {dimension_numbers = #tpu.dot_dimension_numbers<[1], [0], [0], [1], [0, 0, 1, 1], [], []>} : vector<2x2xf32>, vector<2x32xf32>, vector<2x32xf32> -> vector<2x32xf32>
    %143 = vector.broadcast %c3_i32 : i32 to vector<2x1xi32>
    %144 = arith.cmpi eq, %2, %143 : vector<2x1xi32>
    %145 = vector.shape_cast %144 : vector<2x1xi1> to vector<2x1xi1>
    %146 = vector.broadcast %145 : vector<2x1xi1> to vector<2x32xi1>
    %147 = arith.select %146, %142, %111 : vector<2x32xi1>, vector<2x32xf32>
    %c4_i32 = arith.constant 4 : i32
    %148 = arith.index_cast %c4_i32 : i32 to index
    %c0_33 = arith.constant 0 : index
    %c0_34 = arith.constant 0 : index
    %149 = vector.load %arg0[%148, %c0_33, %c0_34] : memref<8x2x128xf32, #tpu.memory_space<vmem>>, vector<1x2x128xf32>
    %150 = vector.shape_cast %149 : vector<1x2x128xf32> to vector<2x128xf32>
    %cst_35 = arith.constant dense<0.000000e+00> : vector<2x128xf32>
    %151 = tpu.matmul %141, %0, %cst_35 {dimension_numbers = #tpu.dot_dimension_numbers<[1], [0], [0], [1], [0, 0, 1, 1], [], []>} : vector<2x32xf32>, vector<32x128xf32>, vector<2x128xf32> -> vector<2x128xf32>
    %152 = arith.addf %150, %151 : vector<2x128xf32>
    %153 = vector.extract_strided_slice %152 {offsets = [0, 0], sizes = [2, 32], strides = [1, 1]} : vector<2x128xf32> to vector<2x32xf32>
    %154 = arith.negf %153 : vector<2x32xf32>
    %155 = math.exp %154 : vector<2x32xf32>
    %cst_36 = arith.constant 1.000000e+00 : f32
    %156 = vector.broadcast %cst_36 : f32 to vector<2x32xf32>
    %157 = arith.addf %156, %155 : vector<2x32xf32>
    %158 = arith.divf %156, %157 : vector<2x32xf32>
    %159 = vector.extract_strided_slice %152 {offsets = [0, 32], sizes = [2, 32], strides = [1, 1]} : vector<2x128xf32> to vector<2x32xf32>
    %160 = arith.negf %159 : vector<2x32xf32>
    %161 = math.exp %160 : vector<2x32xf32>
    %cst_37 = arith.constant 1.000000e+00 : f32
    %162 = vector.broadcast %cst_37 : f32 to vector<2x32xf32>
    %163 = arith.addf %162, %161 : vector<2x32xf32>
    %164 = arith.divf %162, %163 : vector<2x32xf32>
    %165 = vector.extract_strided_slice %152 {offsets = [0, 64], sizes = [2, 32], strides = [1, 1]} : vector<2x128xf32> to vector<2x32xf32>
    %166 = math.tanh %165 : vector<2x32xf32>
    %167 = vector.extract_strided_slice %152 {offsets = [0, 96], sizes = [2, 32], strides = [1, 1]} : vector<2x128xf32> to vector<2x32xf32>
    %168 = arith.negf %167 : vector<2x32xf32>
    %169 = math.exp %168 : vector<2x32xf32>
    %cst_38 = arith.constant 1.000000e+00 : f32
    %170 = vector.broadcast %cst_38 : f32 to vector<2x32xf32>
    %171 = arith.addf %170, %169 : vector<2x32xf32>
    %172 = arith.divf %170, %171 : vector<2x32xf32>
    %173 = arith.mulf %164, %139 : vector<2x32xf32>
    %174 = arith.mulf %158, %166 : vector<2x32xf32>
    %175 = arith.addf %173, %174 : vector<2x32xf32>
    %176 = math.tanh %175 : vector<2x32xf32>
    %177 = arith.mulf %172, %176 : vector<2x32xf32>
    %cst_39 = arith.constant dense<0.000000e+00> : vector<2x32xf32>
    %178 = tpu.matmul %1, %177, %cst_39 {dimension_numbers = #tpu.dot_dimension_numbers<[1], [0], [0], [1], [0, 0, 1, 1], [], []>} : vector<2x2xf32>, vector<2x32xf32>, vector<2x32xf32> -> vector<2x32xf32>
    %179 = vector.broadcast %c4_i32 : i32 to vector<2x1xi32>
    %180 = arith.cmpi eq, %2, %179 : vector<2x1xi32>
    %181 = vector.shape_cast %180 : vector<2x1xi1> to vector<2x1xi1>
    %182 = vector.broadcast %181 : vector<2x1xi1> to vector<2x32xi1>
    %183 = arith.select %182, %178, %147 : vector<2x32xi1>, vector<2x32xf32>
    %c5_i32 = arith.constant 5 : i32
    %184 = arith.index_cast %c5_i32 : i32 to index
    %c0_40 = arith.constant 0 : index
    %c0_41 = arith.constant 0 : index
    %185 = vector.load %arg0[%184, %c0_40, %c0_41] : memref<8x2x128xf32, #tpu.memory_space<vmem>>, vector<1x2x128xf32>
    %186 = vector.shape_cast %185 : vector<1x2x128xf32> to vector<2x128xf32>
    %cst_42 = arith.constant dense<0.000000e+00> : vector<2x128xf32>
    %187 = tpu.matmul %177, %0, %cst_42 {dimension_numbers = #tpu.dot_dimension_numbers<[1], [0], [0], [1], [0, 0, 1, 1], [], []>} : vector<2x32xf32>, vector<32x128xf32>, vector<2x128xf32> -> vector<2x128xf32>
    %188 = arith.addf %186, %187 : vector<2x128xf32>
    %189 = vector.extract_strided_slice %188 {offsets = [0, 0], sizes = [2, 32], strides = [1, 1]} : vector<2x128xf32> to vector<2x32xf32>
    %190 = arith.negf %189 : vector<2x32xf32>
    %191 = math.exp %190 : vector<2x32xf32>
    %cst_43 = arith.constant 1.000000e+00 : f32
    %192 = vector.broadcast %cst_43 : f32 to vector<2x32xf32>
    %193 = arith.addf %192, %191 : vector<2x32xf32>
    %194 = arith.divf %192, %193 : vector<2x32xf32>
    %195 = vector.extract_strided_slice %188 {offsets = [0, 32], sizes = [2, 32], strides = [1, 1]} : vector<2x128xf32> to vector<2x32xf32>
    %196 = arith.negf %195 : vector<2x32xf32>
    %197 = math.exp %196 : vector<2x32xf32>
    %cst_44 = arith.constant 1.000000e+00 : f32
    %198 = vector.broadcast %cst_44 : f32 to vector<2x32xf32>
    %199 = arith.addf %198, %197 : vector<2x32xf32>
    %200 = arith.divf %198, %199 : vector<2x32xf32>
    %201 = vector.extract_strided_slice %188 {offsets = [0, 64], sizes = [2, 32], strides = [1, 1]} : vector<2x128xf32> to vector<2x32xf32>
    %202 = math.tanh %201 : vector<2x32xf32>
    %203 = vector.extract_strided_slice %188 {offsets = [0, 96], sizes = [2, 32], strides = [1, 1]} : vector<2x128xf32> to vector<2x32xf32>
    %204 = arith.negf %203 : vector<2x32xf32>
    %205 = math.exp %204 : vector<2x32xf32>
    %cst_45 = arith.constant 1.000000e+00 : f32
    %206 = vector.broadcast %cst_45 : f32 to vector<2x32xf32>
    %207 = arith.addf %206, %205 : vector<2x32xf32>
    %208 = arith.divf %206, %207 : vector<2x32xf32>
    %209 = arith.mulf %200, %175 : vector<2x32xf32>
    %210 = arith.mulf %194, %202 : vector<2x32xf32>
    %211 = arith.addf %209, %210 : vector<2x32xf32>
    %212 = math.tanh %211 : vector<2x32xf32>
    %213 = arith.mulf %208, %212 : vector<2x32xf32>
    %cst_46 = arith.constant dense<0.000000e+00> : vector<2x32xf32>
    %214 = tpu.matmul %1, %213, %cst_46 {dimension_numbers = #tpu.dot_dimension_numbers<[1], [0], [0], [1], [0, 0, 1, 1], [], []>} : vector<2x2xf32>, vector<2x32xf32>, vector<2x32xf32> -> vector<2x32xf32>
    %215 = vector.broadcast %c5_i32 : i32 to vector<2x1xi32>
    %216 = arith.cmpi eq, %2, %215 : vector<2x1xi32>
    %217 = vector.shape_cast %216 : vector<2x1xi1> to vector<2x1xi1>
    %218 = vector.broadcast %217 : vector<2x1xi1> to vector<2x32xi1>
    %219 = arith.select %218, %214, %183 : vector<2x32xi1>, vector<2x32xf32>
    %c6_i32 = arith.constant 6 : i32
    %220 = arith.index_cast %c6_i32 : i32 to index
    %c0_47 = arith.constant 0 : index
    %c0_48 = arith.constant 0 : index
    %221 = vector.load %arg0[%220, %c0_47, %c0_48] : memref<8x2x128xf32, #tpu.memory_space<vmem>>, vector<1x2x128xf32>
    %222 = vector.shape_cast %221 : vector<1x2x128xf32> to vector<2x128xf32>
    %cst_49 = arith.constant dense<0.000000e+00> : vector<2x128xf32>
    %223 = tpu.matmul %213, %0, %cst_49 {dimension_numbers = #tpu.dot_dimension_numbers<[1], [0], [0], [1], [0, 0, 1, 1], [], []>} : vector<2x32xf32>, vector<32x128xf32>, vector<2x128xf32> -> vector<2x128xf32>
    %224 = arith.addf %222, %223 : vector<2x128xf32>
    %225 = vector.extract_strided_slice %224 {offsets = [0, 0], sizes = [2, 32], strides = [1, 1]} : vector<2x128xf32> to vector<2x32xf32>
    %226 = arith.negf %225 : vector<2x32xf32>
    %227 = math.exp %226 : vector<2x32xf32>
    %cst_50 = arith.constant 1.000000e+00 : f32
    %228 = vector.broadcast %cst_50 : f32 to vector<2x32xf32>
    %229 = arith.addf %228, %227 : vector<2x32xf32>
    %230 = arith.divf %228, %229 : vector<2x32xf32>
    %231 = vector.extract_strided_slice %224 {offsets = [0, 32], sizes = [2, 32], strides = [1, 1]} : vector<2x128xf32> to vector<2x32xf32>
    %232 = arith.negf %231 : vector<2x32xf32>
    %233 = math.exp %232 : vector<2x32xf32>
    %cst_51 = arith.constant 1.000000e+00 : f32
    %234 = vector.broadcast %cst_51 : f32 to vector<2x32xf32>
    %235 = arith.addf %234, %233 : vector<2x32xf32>
    %236 = arith.divf %234, %235 : vector<2x32xf32>
    %237 = vector.extract_strided_slice %224 {offsets = [0, 64], sizes = [2, 32], strides = [1, 1]} : vector<2x128xf32> to vector<2x32xf32>
    %238 = math.tanh %237 : vector<2x32xf32>
    %239 = vector.extract_strided_slice %224 {offsets = [0, 96], sizes = [2, 32], strides = [1, 1]} : vector<2x128xf32> to vector<2x32xf32>
    %240 = arith.negf %239 : vector<2x32xf32>
    %241 = math.exp %240 : vector<2x32xf32>
    %cst_52 = arith.constant 1.000000e+00 : f32
    %242 = vector.broadcast %cst_52 : f32 to vector<2x32xf32>
    %243 = arith.addf %242, %241 : vector<2x32xf32>
    %244 = arith.divf %242, %243 : vector<2x32xf32>
    %245 = arith.mulf %236, %211 : vector<2x32xf32>
    %246 = arith.mulf %230, %238 : vector<2x32xf32>
    %247 = arith.addf %245, %246 : vector<2x32xf32>
    %248 = math.tanh %247 : vector<2x32xf32>
    %249 = arith.mulf %244, %248 : vector<2x32xf32>
    %cst_53 = arith.constant dense<0.000000e+00> : vector<2x32xf32>
    %250 = tpu.matmul %1, %249, %cst_53 {dimension_numbers = #tpu.dot_dimension_numbers<[1], [0], [0], [1], [0, 0, 1, 1], [], []>} : vector<2x2xf32>, vector<2x32xf32>, vector<2x32xf32> -> vector<2x32xf32>
    %251 = vector.broadcast %c6_i32 : i32 to vector<2x1xi32>
    %252 = arith.cmpi eq, %2, %251 : vector<2x1xi32>
    %253 = vector.shape_cast %252 : vector<2x1xi1> to vector<2x1xi1>
    %254 = vector.broadcast %253 : vector<2x1xi1> to vector<2x32xi1>
    %255 = arith.select %254, %250, %219 : vector<2x32xi1>, vector<2x32xf32>
    %c7_i32 = arith.constant 7 : i32
    %256 = arith.index_cast %c7_i32 : i32 to index
    %c0_54 = arith.constant 0 : index
    %c0_55 = arith.constant 0 : index
    %257 = vector.load %arg0[%256, %c0_54, %c0_55] : memref<8x2x128xf32, #tpu.memory_space<vmem>>, vector<1x2x128xf32>
    %258 = vector.shape_cast %257 : vector<1x2x128xf32> to vector<2x128xf32>
    %cst_56 = arith.constant dense<0.000000e+00> : vector<2x128xf32>
    %259 = tpu.matmul %249, %0, %cst_56 {dimension_numbers = #tpu.dot_dimension_numbers<[1], [0], [0], [1], [0, 0, 1, 1], [], []>} : vector<2x32xf32>, vector<32x128xf32>, vector<2x128xf32> -> vector<2x128xf32>
    %260 = arith.addf %258, %259 : vector<2x128xf32>
    %261 = vector.extract_strided_slice %260 {offsets = [0, 0], sizes = [2, 32], strides = [1, 1]} : vector<2x128xf32> to vector<2x32xf32>
    %262 = arith.negf %261 : vector<2x32xf32>
    %263 = math.exp %262 : vector<2x32xf32>
    %cst_57 = arith.constant 1.000000e+00 : f32
    %264 = vector.broadcast %cst_57 : f32 to vector<2x32xf32>
    %265 = arith.addf %264, %263 : vector<2x32xf32>
    %266 = arith.divf %264, %265 : vector<2x32xf32>
    %267 = vector.extract_strided_slice %260 {offsets = [0, 32], sizes = [2, 32], strides = [1, 1]} : vector<2x128xf32> to vector<2x32xf32>
    %268 = arith.negf %267 : vector<2x32xf32>
    %269 = math.exp %268 : vector<2x32xf32>
    %cst_58 = arith.constant 1.000000e+00 : f32
    %270 = vector.broadcast %cst_58 : f32 to vector<2x32xf32>
    %271 = arith.addf %270, %269 : vector<2x32xf32>
    %272 = arith.divf %270, %271 : vector<2x32xf32>
    %273 = vector.extract_strided_slice %260 {offsets = [0, 64], sizes = [2, 32], strides = [1, 1]} : vector<2x128xf32> to vector<2x32xf32>
    %274 = math.tanh %273 : vector<2x32xf32>
    %275 = vector.extract_strided_slice %260 {offsets = [0, 96], sizes = [2, 32], strides = [1, 1]} : vector<2x128xf32> to vector<2x32xf32>
    %276 = arith.negf %275 : vector<2x32xf32>
    %277 = math.exp %276 : vector<2x32xf32>
    %cst_59 = arith.constant 1.000000e+00 : f32
    %278 = vector.broadcast %cst_59 : f32 to vector<2x32xf32>
    %279 = arith.addf %278, %277 : vector<2x32xf32>
    %280 = arith.divf %278, %279 : vector<2x32xf32>
    %281 = arith.mulf %272, %247 : vector<2x32xf32>
    %282 = arith.mulf %266, %274 : vector<2x32xf32>
    %283 = arith.addf %281, %282 : vector<2x32xf32>
    %284 = math.tanh %283 : vector<2x32xf32>
    %285 = arith.mulf %280, %284 : vector<2x32xf32>
    %cst_60 = arith.constant dense<0.000000e+00> : vector<2x32xf32>
    %286 = tpu.matmul %1, %285, %cst_60 {dimension_numbers = #tpu.dot_dimension_numbers<[1], [0], [0], [1], [0, 0, 1, 1], [], []>} : vector<2x2xf32>, vector<2x32xf32>, vector<2x32xf32> -> vector<2x32xf32>
    %287 = vector.broadcast %c7_i32 : i32 to vector<2x1xi32>
    %288 = arith.cmpi eq, %2, %287 : vector<2x1xi32>
    %289 = vector.shape_cast %288 : vector<2x1xi1> to vector<2x1xi1>
    %290 = vector.broadcast %289 : vector<2x1xi1> to vector<2x32xi1>
    %291 = arith.select %290, %286, %255 : vector<2x32xi1>, vector<2x32xf32>
    %c8_i32 = arith.constant 8 : i32
    %c0_61 = arith.constant 0 : index
    %c0_62 = arith.constant 0 : index
    %292 = vector.load %arg4[%c0_61, %c0_62] : memref<2x32xf32, #tpu.memory_space<vmem>>, vector<2x32xf32>
    tpu.vector_store %arg4[%c0_61, %c0_62], %291 {strides = array<i32>} : memref<2x32xf32, #tpu.memory_space<vmem>>, vector<2x32xf32>,
    return
  }
}

</mosaic_0001>

<bundles_post_ra>
// kernel: jet_rnn_forward.1
= control target key start
LH: loop header
LB: loop body
LE: loop exit
PB: predicated region body
PF: predicated region fallthrough
CT: control target
= control target key end

     0   :  { %v1810_v1 = vmov 0.0   ;;  %vm1811_vm0 = vmmov 0   ;;  %s2085_s0 = inlined_call_operand.vmem [shape: f32[8,2,128], index: 0, kind: input, shape index: {}]   ;;  %s2086_s1 = inlined_call_operand.vmem [shape: f32[32,128], index: 1, kind: input, shape index: {}]   ;;  %s2087_s2 = inlined_call_operand.vmem [shape: s32[2,1], index: 2, kind: input, shape index: {}]   ;;  %s2088_s3 = inlined_call_operand.vmem [shape: f32[2,2], index: 3, kind: input, shape index: {}]   ;;  %s2089_s4 = inlined_call_operand.hbm [shape: f32[2,32], index: 4, kind: output, shape index: {}]  }
   0x1   :  { %v1844_v0 = vld [vmem:[%s2086_s1 + $0x18] sm:$0xff]  ;;  %1588 = vmatprep.subr.mxu0 %v1810_v1  ;;  %v1850_v2 = vld [vmem:[%s2086_s1 + $0x10] sm:$0xff]  ;;  %1596 = vmatprep.mubr.msk.f32.mxu0 %vm1811_vm0, %v1810_v1 }
   0x2   :  { %9 = vsyncpa [#allocation3], 0  ;;  %1589 = vmatpush3.msra.mxu0 %v1844_v0  ;;  %1599 = vmatprep.subr.mxu1 %v1810_v1  ;;  %v1860_v3 = vld [vmem:[%s2086_s1 + $0x8] sm:$0xff]  ;;  %v1869_v4 = vld [vmem:[%s2086_s1] sm:$0xff]  ;;  %s1812_s1 = smov 64   ;;  %s1813_s25 = smov 32  }
   0x3   :  { %1590 = vmatprep.subr.mxu0 %v1810_v1  ;;  %1601 = vmatprep.mubr.msk.f32.mxu1 %vm1811_vm0, %v1810_v1  ;;  %v24_v5 = vld [vmem:[%s2085_s0] sm:$0x3]  ;;  %vm131_vm1 = vcmask 1041408   ;;  %vm127_vm2 = vcmask 15360   ;;  %vm25_vm3 = vcmask 261120  }
   0x4   :  { %1591 = vmatpush3.msra.mxu0 %v1850_v2  ;;  %v1888_v22 = vld [vmem:[%s2088_s3] sm:$0x3]  ;;  %v1497_v26 = vld [vmem:[%s2085_s0 + $0x2] sm:$0x3]  ;;  %v1502_v44 = vld [vmem:[%s2085_s0 + $0x4] sm:$0x3] }
   0x5   :  { %1592 = vmatprep.subr.mxu0 %v1810_v1 }
   0x6   :  { %1593 = vmatpush3.msra.mxu0 %v1860_v3 }
   0x7   :  { %1594 = vmatprep.subr.mxu0 %v1810_v1 }
   0x8   :  { %1595 = vmatpush3.msra.mxu0 %v1869_v4 }
   0x9   :  { %1597 = vmatmul.mubr.f32.vlgmr.msra.gmra.mxu0 %v1810_v1  ;;  %1615 = vmatprep.subr.mxu0 %v1810_v1 }
   0xa   :  { %1617 = vmatprep.mubr.msk.f32.mxu0 %vm1811_vm0, %v1810_v1 }
  0xc9   :  { %v95_v6 = vpop.f32.mrf.mxu0 }
  0xca   :  { %v99_v7 = vadd.f32 %v95_v6, %v24_v5 }
  0xcb   :  { %v1598_v8 = vpop.f32.mrf.mxu0 }
  0xcc   :  { %1724 = vtanh.f32 %v99_v7  ;;  %v1494_v10 = vmul.f32 -1.442695, %v99_v7  ;;  %v1507_v7 = vld [vmem:[%s2085_s0 + $0x6] sm:$0x3] }
  0xce   :  { %1726 = vpow2.f32 %v1494_v10 }
  0xd9   :  { %v1725_v9 = vpop.eup %1724 }
  0xda   :  { %109 = vrot.lane.b32.xlu0 %v1725_v9, %s1812_s1 }
  0xdb   :  { %v1727_v11 = vpop.eup %1726 }
  0xdc   :  { %v103_v12 = vadd.f32 1.0, %v1727_v11 }
  0xde   :  { %1728 = vrcp.f32 %v103_v12 }
  0xeb   :  { %v1729_v13 = vpop.eup %1728 }
  0xec   :  { %v107_v16 = vmul.f32 0.0, %v1729_v13 }
 0x14c   :  { %v110_v14 = vpop.permute.xlu0 %109 }
 0x14d   :  { %v112_v15 = vmul.f32 %v1729_v13, %v110_v14 }
 0x14f   :  { %114 = vrot.lane.b32.xlu0 %v112_v15, %s1813_s25 }
 0x1c1   :  { %v115_v17 = vpop.permute.xlu0 %114 }
 0x1c2   :  { %v117_v18 = vadd.f32 %v115_v17, %v107_v16 }
 0x1c4   :  { %1730 = vtanh.f32 %v117_v18 }
 0x1d1   :  { %v1731_v19 = vpop.eup %1730 }
 0x1d2   :  { %120 = vrot.lane.b32.xlu1 %v1731_v19, %s1812_s1 }
 0x244   :  { %v121_v20 = vpop.permute.xlu1 %120 }
 0x245   :  { %v123_v21 = vmul.f32 %v1729_v13, %v121_v20 }
 0x247   :  { %125 = vrot.lane.b32.xlu1 %v123_v21, %s1813_s25 }
 0x2b9   :  { %v126_v23 = vpop.permute.xlu1 %125 }
 0x2ba   :  { %1600 = vmatpush3.msk.msra.mxu1 %vm131_vm1, %v126_v23 }
 0x2bb   :  { %1602 = vmatmul.mubr.msk.f32.vlgmr.msra.gmra.mxu1 %vm127_vm2, %v1888_v22  ;;  %1604 = vmatprep.subr.mxu1 %v1810_v1 }
 0x2bc   :  { %1605 = vmatpush3.msra.mxu1 %v1844_v0  ;;  %1612 = vmatprep.mubr.msk.f32.mxu1 %vm1811_vm0, %v1810_v1 }
 0x2bd   :  { %1606 = vmatprep.subr.mxu1 %v1810_v1 }
 0x2be   :  { %1607 = vmatpush3.msra.mxu1 %v1850_v2 }
 0x2bf   :  { %1608 = vmatprep.subr.mxu1 %v1810_v1 }
 0x2c0   :  { %1609 = vmatpush3.msra.mxu1 %v1860_v3 }
 0x2c1   :  { %1610 = vmatprep.subr.mxu1 %v1810_v1 }
 0x2c2   :  { %1611 = vmatpush3.msra.mxu1 %v1869_v4 }
 0x2c3   :  { %1613 = vmatmul.mubr.msk.f32.vlgmr.msra.gmra.mxu1 %vm25_vm3, %v126_v23  ;;  %1620 = vmatprep.subr.mxu1 %v1810_v1 }
 0x2c4   :  { %1621 = vmatpush3.msra.mxu1 %v1844_v0  ;;  %1628 = vmatprep.mubr.msk.f32.mxu1 %vm1811_vm0, %v1810_v1 }
 0x2c5   :  { %1622 = vmatprep.subr.mxu1 %v1810_v1 }
 0x2c6   :  { %1623 = vmatpush3.msra.mxu1 %v1850_v2 }
 0x2c7   :  { %1624 = vmatprep.subr.mxu1 %v1810_v1 }
 0x2c8   :  { %1625 = vmatpush3.msra.mxu1 %v1860_v3 }
 0x2c9   :  { %1626 = vmatprep.subr.mxu1 %v1810_v1 }
 0x2ca   :  { %1627 = vmatpush3.msra.mxu1 %v1869_v4 }
 0x2cb   :  { %1647 = vmatprep.subr.mxu1 %v1810_v1 }
 0x37b   :  { %v1915_v24 = vpop.f32.mrf.mxu1 }
 0x37d   :  { %v1603_v25 = vpop.f32.mrf.mxu1 }
 0x383   :  { %v281_v27 = vpop.f32.mrf.mxu1 }
 0x384   :  { %v285_v28 = vadd.f32 %v1497_v26, %v281_v27 }
 0x385   :  { %v1614_v29 = vpop.f32.mrf.mxu1 }
 0x386   :  { %1732 = vtanh.f32 %v285_v28  ;;  %v1499_v31 = vmul.f32 -1.442695, %v285_v28  ;;  %v1512_v29 = vld [vmem:[%s2085_s0 + $0x8] sm:$0x3] }
 0x388   :  { %1734 = vpow2.f32 %v1499_v31 }
 0x393   :  { %v1733_v30 = vpop.eup %1732 }
 0x394   :  { %295 = vrot.lane.b32.xlu0 %v1733_v30, %s1812_s1 }
 0x395   :  { %v1735_v32 = vpop.eup %1734 }
 0x396   :  { %v289_v33 = vadd.f32 1.0, %v1735_v32 }
 0x398   :  { %1736 = vrcp.f32 %v289_v33 }
 0x3a5   :  { %v1737_v34 = vpop.eup %1736 }
 0x3a6   :  { %v293_v37 = vmul.f32 %v1737_v34, %v117_v18 }
 0x406   :  { %v296_v35 = vpop.permute.xlu0 %295 }
 0x407   :  { %v298_v36 = vmul.f32 %v1737_v34, %v296_v35 }
 0x409   :  { %300 = vrot.lane.b32.xlu1 %v298_v36, %s1813_s25 }
 0x47b   :  { %v301_v38 = vpop.permute.xlu1 %300 }
 0x47c   :  { %v303_v39 = vadd.f32 %v301_v38, %v293_v37 }
 0x47e   :  { %1738 = vtanh.f32 %v303_v39 }
 0x48b   :  { %v1739_v40 = vpop.eup %1738 }
 0x48c   :  { %306 = vrot.lane.b32.xlu0 %v1739_v40, %s1812_s1 }
 0x4fe   :  { %v307_v41 = vpop.permute.xlu0 %306 }
 0x4ff   :  { %v309_v42 = vmul.f32 %v1737_v34, %v307_v41 }
 0x501   :  { %311 = vrot.lane.b32.xlu1 %v309_v42, %s1813_s25 }
 0x573   :  { %v312_v43 = vpop.permute.xlu1 %311 }
 0x574   :  { %1616 = vmatpush3.msk.msra.mxu0 %vm131_vm1, %v312_v43  ;;  %1629 = vmatmul.mubr.msk.f32.vlgmr.msra.gmra.mxu1 %vm25_vm3, %v312_v43 }
 0x575   :  { %1618 = vmatmul.mubr.msk.f32.vlgmr.msra.gmra.mxu0 %vm127_vm2, %v1888_v22  ;;  %1631 = vmatprep.subr.mxu0 %v1810_v1 }
 0x576   :  { %1633 = vmatprep.mubr.msk.f32.mxu0 %vm1811_vm0, %v1810_v1  ;;  %1649 = vmatprep.mubr.msk.f32.mxu1 %vm1811_vm0, %v1810_v1 }
 0x634   :  { %v462_v45 = vpop.f32.mrf.mxu1 }
 0x635   :  { %v466_v46 = vadd.f32 %v1502_v44, %v462_v45  ;;  %v1939_v59 = vpop.f32.mrf.mxu0 }
 0x636   :  { %v1630_v47 = vpop.f32.mrf.mxu1 }
 0x637   :  { %1740 = vtanh.f32 %v466_v46  ;;  %v1504_v49 = vmul.f32 -1.442695, %v466_v46  ;;  %v1619_v62 = vpop.f32.mrf.mxu0 }
 0x639   :  { %1742 = vpow2.f32 %v1504_v49  ;;  %v1517_v49 = vld [vmem:[%s2085_s0 + $0xa] sm:$0x3] }
 0x644   :  { %v1741_v48 = vpop.eup %1740 }
 0x645   :  { %476 = vrot.lane.b32.xlu0 %v1741_v48, %s1812_s1 }
 0x646   :  { %v1743_v50 = vpop.eup %1742 }
 0x647   :  { %v470_v51 = vadd.f32 1.0, %v1743_v50 }
 0x649   :  { %1744 = vrcp.f32 %v470_v51 }
 0x656   :  { %v1745_v52 = vpop.eup %1744 }
 0x657   :  { %v474_v55 = vmul.f32 %v1745_v52, %v303_v39 }
 0x6b7   :  { %v477_v53 = vpop.permute.xlu0 %476 }
 0x6b8   :  { %v479_v54 = vmul.f32 %v1745_v52, %v477_v53 }
 0x6ba   :  { %481 = vrot.lane.b32.xlu1 %v479_v54, %s1813_s25 }
 0x72c   :  { %v482_v56 = vpop.permute.xlu1 %481 }
 0x72d   :  { %v484_v57 = vadd.f32 %v482_v56, %v474_v55 }
 0x72f   :  { %1746 = vtanh.f32 %v484_v57 }
 0x73c   :  { %v1747_v58 = vpop.eup %1746 }
 0x73d   :  { %487 = vrot.lane.b32.xlu0 %v1747_v58, %s1812_s1 }
 0x7af   :  { %v488_v60 = vpop.permute.xlu0 %487 }
 0x7b0   :  { %v490_v61 = vmul.f32 %v1745_v52, %v488_v60 }
 0x7b2   :  { %492 = vrot.lane.b32.xlu1 %v490_v61, %s1813_s25 }
 0x824   :  { %v493_v63 = vpop.permute.xlu1 %492 }
 0x825   :  { %1632 = vmatpush3.msk.msra.mxu0 %vm131_vm1, %v493_v63 }
 0x826   :  { %1634 = vmatmul.mubr.msk.f32.vlgmr.msra.gmra.mxu0 %vm127_vm2, %v1888_v22  ;;  %1636 = vmatprep.subr.mxu0 %v1810_v1 }
 0x827   :  { %1637 = vmatpush3.msra.mxu0 %v1844_v0  ;;  %1644 = vmatprep.mubr.msk.f32.mxu0 %vm1811_vm0, %v1810_v1 }
 0x828   :  { %1638 = vmatprep.subr.mxu0 %v1810_v1 }
 0x829   :  { %1639 = vmatpush3.msra.mxu0 %v1850_v2 }
 0x82a   :  { %1640 = vmatprep.subr.mxu0 %v1810_v1 }
 0x82b   :  { %1641 = vmatpush3.msra.mxu0 %v1860_v3 }
 0x82c   :  { %1642 = vmatprep.subr.mxu0 %v1810_v1 }
 0x82d   :  { %1643 = vmatpush3.msra.mxu0 %v1869_v4 }
 0x82e   :  { %1645 = vmatmul.mubr.msk.f32.vlgmr.msra.gmra.mxu0 %vm25_vm3, %v493_v63  ;;  %1663 = vmatprep.subr.mxu0 %v1810_v1 }
 0x82f   :  { %1665 = vmatprep.mubr.msk.f32.mxu0 %vm1811_vm0, %v1810_v1 }
 0x8e6   :  { %v1959_v5 = vpop.f32.mrf.mxu0 }
 0x8e8   :  { %v1635_v6 = vpop.f32.mrf.mxu0 }
 0x8ee   :  { %v643_v8 = vpop.f32.mrf.mxu0 }
 0x8ef   :  { %v647_v9 = vadd.f32 %v1507_v7, %v643_v8 }
 0x8f0   :  { %v1646_v10 = vpop.f32.mrf.mxu0 }
 0x8f1   :  { %1748 = vtanh.f32 %v647_v9  ;;  %v1509_v12 = vmul.f32 -1.442695, %v647_v9 }
 0x8f3   :  { %1750 = vpow2.f32 %v1509_v12  ;;  %v1522_v12 = vld [vmem:[%s2085_s0 + $0xc] sm:$0x3] }
 0x8fe   :  { %v1749_v11 = vpop.eup %1748 }
 0x8ff   :  { %657 = vrot.lane.b32.xlu0 %v1749_v11, %s1812_s1 }
 0x900   :  { %v1751_v13 = vpop.eup %1750 }
 0x901   :  { %v651_v14 = vadd.f32 1.0, %v1751_v13 }
 0x903   :  { %1752 = vrcp.f32 %v651_v14 }
 0x910   :  { %v1753_v15 = vpop.eup %1752 }
 0x911   :  { %v655_v18 = vmul.f32 %v1753_v15, %v484_v57 }
 0x971   :  { %v658_v16 = vpop.permute.xlu0 %657 }
 0x972   :  { %v660_v17 = vmul.f32 %v1753_v15, %v658_v16 }
 0x974   :  { %662 = vrot.lane.b32.xlu1 %v660_v17, %s1813_s25 }
 0x9e6   :  { %v663_v19 = vpop.permute.xlu1 %662 }
 0x9e7   :  { %v665_v20 = vadd.f32 %v663_v19, %v655_v18 }
 0x9e9   :  { %1754 = vtanh.f32 %v665_v20 }
 0x9f6   :  { %v1755_v21 = vpop.eup %1754 }
 0x9f7   :  { %668 = vrot.lane.b32.xlu0 %v1755_v21, %s1812_s1 }
 0xa69   :  { %v669_v23 = vpop.permute.xlu0 %668 }
 0xa6a   :  { %v671_v25 = vmul.f32 %v1753_v15, %v669_v23 }
 0xa6c   :  { %673 = vrot.lane.b32.xlu1 %v671_v25, %s1813_s25 }
 0xade   :  { %v674_v26 = vpop.permute.xlu1 %673 }
 0xadf   :  { %1648 = vmatpush3.msk.msra.mxu1 %vm131_vm1, %v674_v26 }
 0xae0   :  { %1650 = vmatmul.mubr.msk.f32.vlgmr.msra.gmra.mxu1 %vm127_vm2, %v1888_v22  ;;  %1652 = vmatprep.subr.mxu1 %v1810_v1 }
 0xae1   :  { %1653 = vmatpush3.msra.mxu1 %v1844_v0  ;;  %1660 = vmatprep.mubr.msk.f32.mxu1 %vm1811_vm0, %v1810_v1 }
 0xae2   :  { %1654 = vmatprep.subr.mxu1 %v1810_v1 }
 0xae3   :  { %1655 = vmatpush3.msra.mxu1 %v1850_v2 }
 0xae4   :  { %1656 = vmatprep.subr.mxu1 %v1810_v1 }
 0xae5   :  { %1657 = vmatpush3.msra.mxu1 %v1860_v3 }
 0xae6   :  { %1658 = vmatprep.subr.mxu1 %v1810_v1 }
 0xae7   :  { %1659 = vmatpush3.msra.mxu1 %v1869_v4 }
 0xae8   :  { %1661 = vmatmul.mubr.msk.f32.vlgmr.msra.gmra.mxu1 %vm25_vm3, %v674_v26  ;;  %1679 = vmatprep.subr.mxu1 %v1810_v1 }
 0xae9   :  { %1681 = vmatprep.mubr.msk.f32.mxu1 %vm1811_vm0, %v1810_v1 }
 0xba0   :  { %v1985_v27 = vpop.f32.mrf.mxu1 }
 0xba2   :  { %v1651_v28 = vpop.f32.mrf.mxu1 }
 0xba8   :  { %v824_v30 = vpop.f32.mrf.mxu1 }
 0xba9   :  { %v828_v31 = vadd.f32 %v1512_v29, %v824_v30 }
 0xbaa   :  { %v1662_v32 = vpop.f32.mrf.mxu1 }
 0xbab   :  { %1756 = vtanh.f32 %v828_v31  ;;  %v1514_v34 = vmul.f32 -1.442695, %v828_v31 }
 0xbad   :  { %1758 = vpow2.f32 %v1514_v34  ;;  %v1527_v34 = vld [vmem:[%s2085_s0 + $0xe] sm:$0x3] }
 0xbb8   :  { %v1757_v33 = vpop.eup %1756 }
 0xbb9   :  { %838 = vrot.lane.b32.xlu0 %v1757_v33, %s1812_s1 }
 0xbba   :  { %v1759_v35 = vpop.eup %1758 }
 0xbbb   :  { %v832_v36 = vadd.f32 1.0, %v1759_v35 }
 0xbbd   :  { %1760 = vrcp.f32 %v832_v36 }
 0xbca   :  { %v1761_v37 = vpop.eup %1760 }
 0xbcb   :  { %v836_v40 = vmul.f32 %v1761_v37, %v665_v20 }
 0xc2b   :  { %v839_v38 = vpop.permute.xlu0 %838 }
 0xc2c   :  { %v841_v39 = vmul.f32 %v1761_v37, %v839_v38 }
 0xc2e   :  { %843 = vrot.lane.b32.xlu1 %v841_v39, %s1813_s25 }
 0xca0   :  { %v844_v41 = vpop.permute.xlu1 %843 }
 0xca1   :  { %v846_v42 = vadd.f32 %v844_v41, %v836_v40  ;;  %v1814_v41 = vmov 0  }
 0xca2   :  { %1722 = vset.pattern.permute.xlu0 %v1814_v41  ;;  %1723 = vset.pattern.permute.xlu1 %v1814_v41 }
 0xca3   :  { %1762 = vtanh.f32 %v846_v42 }
 0xcb0   :  { %v1763_v43 = vpop.eup %1762 }
 0xcb1   :  { %849 = vrot.lane.b32.xlu0 %v1763_v43, %s1812_s1 }
 0xd23   :  { %v850_v44 = vpop.permute.xlu0 %849 }
 0xd24   :  { %v852_v45 = vmul.f32 %v1761_v37, %v850_v44 }
 0xd26   :  { %854 = vrot.lane.b32.xlu1 %v852_v45, %s1813_s25  ;;  %v23_v45 = vld [vmem:[%s2087_s2] sm:$0x3]  ;;  %s1815_s2 = smov [#allocation2]  }
 0xd27   :  { %vm204_vm4 = vcmp.eq.s32.totalorder %v23_v45, 0  ;;  %vm747_vm5 = vcmp.eq.s32.totalorder %v23_v45, 3  ;;  %vm1109_vm6 = vcmp.eq.s32.totalorder %v23_v45, 5  ;;  %vm385_vm7 = vcmp.eq.s32.totalorder %v23_v45, 1  ;;  %s1486_s16 = sshll.u32 %s1815_s2, 4  ;;  %s1487_s16 = int_to_ptr.vmem [resolvable:$true] %s1486_s16 }
 0xd28   :  { %vm566_vm8 = vcmp.eq.s32.totalorder %v23_v45, 2  ;;  %vm928_vm9 = vcmp.eq.s32.totalorder %v23_v45, 4  ;;  %vm1290_vm10 = vcmp.eq.s32.totalorder %v23_v45, 6  ;;  %vm1471_vm11 = vcmp.eq.s32.totalorder %v23_v45, 7  ;;  %s1788_s17 = scalar_lea.vmem %s1487_s16, 32  ;;  %p1793_p1 = scmp.lt.s32.totalorder %s1487_s16, %s1487_s16 }
 0xd29   :  { %p1789_p0 = scmp.ne.s32.totalorder %s1487_s16, %s1788_s17  ;;  %p1794_p2 = scmp.lt.s32.totalorder %s1788_s17, %s1788_s17 }
 0xd2b   :  { %p1795_p3 = por %p1794_p2, %p1793_p1 }
 0xd2d   :  { %p1796_p4 = pnand %p1795_p3, %p1789_p0 }
 0xd98   :  { %v855_v46 = vpop.permute.xlu1 %854 }
 0xd99   :  { %1664 = vmatpush3.msk.msra.mxu0 %vm131_vm1, %v855_v46 }
 0xd9a   :  { %1666 = vmatmul.mubr.msk.f32.vlgmr.msra.gmra.mxu0 %vm127_vm2, %v1888_v22  ;;  %1668 = vmatprep.subr.mxu0 %v1810_v1 }
 0xd9b   :  { %1669 = vmatpush3.msra.mxu0 %v1844_v0  ;;  %1676 = vmatprep.mubr.msk.f32.mxu0 %vm1811_vm0, %v1810_v1 }
 0xd9c   :  { %1670 = vmatprep.subr.mxu0 %v1810_v1 }
 0xd9d   :  { %1671 = vmatpush3.msra.mxu0 %v1850_v2 }
 0xd9e   :  { %1672 = vmatprep.subr.mxu0 %v1810_v1 }
 0xd9f   :  { %1673 = vmatpush3.msra.mxu0 %v1860_v3 }
 0xda0   :  { %1674 = vmatprep.subr.mxu0 %v1810_v1 }
 0xda1   :  { %1675 = vmatpush3.msra.mxu0 %v1869_v4 }
 0xda2   :  { %1677 = vmatmul.mubr.msk.f32.vlgmr.msra.gmra.mxu0 %vm25_vm3, %v855_v46  ;;  %1695 = vmatprep.subr.mxu0 %v1810_v1 }
 0xda3   :  { %1697 = vmatprep.mubr.msk.f32.mxu0 %vm1811_vm0, %v1810_v1 }
 0xe5a   :  { %v2011_v47 = vpop.f32.mrf.mxu0 }
 0xe5c   :  { %v1667_v48 = vpop.f32.mrf.mxu0 }
 0xe5d   :  { %v205_v48 = vsel %vm204_vm4, 1, %v1814_v41 }
 0xe62   :  { %v1005_v50 = vpop.f32.mrf.mxu0 }
 0xe63   :  { %v1009_v51 = vadd.f32 %v1517_v49, %v1005_v50  ;;  %v748_v49 = vsel %vm747_vm5, 1, %v1814_v41  ;;  %v1110_v50 = vsel %vm1109_vm6, 1, %v1814_v41 }
 0xe64   :  { %v1678_v52 = vpop.f32.mrf.mxu0 }
 0xe65   :  { %1764 = vtanh.f32 %v1009_v51  ;;  %v1519_v54 = vmul.f32 -1.442695, %v1009_v51 }
 0xe67   :  { %1766 = vpow2.f32 %v1519_v54  ;;  %v567_v54 = vsel %vm566_vm8, 1, %v1814_v41 }
 0xe72   :  { %v1765_v53 = vpop.eup %1764 }
 0xe73   :  { %1019 = vrot.lane.b32.xlu0 %v1765_v53, %s1812_s1  ;;  %v386_v53 = vsel %vm385_vm7, 1, %v1814_v41 }
 0xe74   :  { %v1767_v55 = vpop.eup %1766 }
 0xe75   :  { %v1013_v56 = vadd.f32 1.0, %v1767_v55  ;;  %v929_v55 = vsel %vm928_vm9, 1, %v1814_v41 }
 0xe77   :  { %1768 = vrcp.f32 %v1013_v56  ;;  %v1291_v56 = vsel %vm1290_vm10, 1, %v1814_v41 }
 0xe84   :  { %v1769_v57 = vpop.eup %1768 }
 0xe85   :  { %v1017_v61 = vmul.f32 %v1769_v57, %v846_v42 }
 0xee5   :  { %v1020_v58 = vpop.permute.xlu0 %1019 }
 0xee6   :  { %v1022_v60 = vmul.f32 %v1769_v57, %v1020_v58 }
 0xee8   :  { %1024 = vrot.lane.b32.xlu1 %v1022_v60, %s1813_s25 }
 0xf5a   :  { %v1025_v62 = vpop.permute.xlu1 %1024 }
 0xf5b   :  { %v1027_v63 = vadd.f32 %v1025_v62, %v1017_v61 }
 0xf5d   :  { %1770 = vtanh.f32 %v1027_v63 }
 0xf6a   :  { %v1771_v6 = vpop.eup %1770 }
 0xf6b   :  { %1030 = vrot.lane.b32.xlu0 %v1771_v6, %s1812_s1 }
 0xfdd   :  { %v1031_v7 = vpop.permute.xlu0 %1030 }
 0xfde   :  { %v1033_v8 = vmul.f32 %v1769_v57, %v1031_v7  ;;  %v1472_v57 = vsel %vm1471_vm11, 1, %v1814_v41 }
 0xfe0   :  { %1035 = vrot.lane.b32.xlu1 %v1033_v8, %s1813_s25 }
0x1052   :  { %v1036_v9 = vpop.permute.xlu1 %1035 }
0x1053   :  { %1680 = vmatpush3.msk.msra.mxu1 %vm131_vm1, %v1036_v9 }
0x1054   :  { %1682 = vmatmul.mubr.msk.f32.vlgmr.msra.gmra.mxu1 %vm127_vm2, %v1888_v22  ;;  %1684 = vmatprep.subr.mxu1 %v1810_v1 }
0x1055   :  { %1685 = vmatpush3.msra.mxu1 %v1844_v0  ;;  %1692 = vmatprep.mubr.msk.f32.mxu1 %vm1811_vm0, %v1810_v1 }
0x1056   :  { %1686 = vmatprep.subr.mxu1 %v1810_v1 }
0x1057   :  { %1687 = vmatpush3.msra.mxu1 %v1850_v2 }
0x1058   :  { %1688 = vmatprep.subr.mxu1 %v1810_v1 }
0x1059   :  { %1689 = vmatpush3.msra.mxu1 %v1860_v3 }
0x105a   :  { %1690 = vmatprep.subr.mxu1 %v1810_v1 }
0x105b   :  { %1691 = vmatpush3.msra.mxu1 %v1869_v4 }
0x105c   :  { %1693 = vmatmul.mubr.msk.f32.vlgmr.msra.gmra.mxu1 %vm25_vm3, %v1036_v9  ;;  %1711 = vmatprep.subr.mxu1 %v1810_v1 }
0x105d   :  { %1713 = vmatprep.mubr.msk.f32.mxu1 %vm1811_vm0, %v1810_v1 }
0x1114   :  { %v2037_v10 = vpop.f32.mrf.mxu1 }
0x1116   :  { %v1683_v11 = vpop.f32.mrf.mxu1 }
0x111c   :  { %v1186_v13 = vpop.f32.mrf.mxu1 }
0x111d   :  { %v1190_v14 = vadd.f32 %v1522_v12, %v1186_v13 }
0x111e   :  { %v1694_v15 = vpop.f32.mrf.mxu1 }
0x111f   :  { %1772 = vtanh.f32 %v1190_v14  ;;  %v1524_v17 = vmul.f32 -1.442695, %v1190_v14 }
0x1121   :  { %1774 = vpow2.f32 %v1524_v17 }
0x112c   :  { %v1773_v16 = vpop.eup %1772 }
0x112d   :  { %1200 = vrot.lane.b32.xlu0 %v1773_v16, %s1812_s1 }
0x112e   :  { %v1775_v18 = vpop.eup %1774 }
0x112f   :  { %v1194_v19 = vadd.f32 1.0, %v1775_v18 }
0x1131   :  { %1776 = vrcp.f32 %v1194_v19 }
0x113e   :  { %v1777_v20 = vpop.eup %1776 }
0x113f   :  { %v1198_v25 = vmul.f32 %v1777_v20, %v1027_v63 }
0x119f   :  { %v1201_v21 = vpop.permute.xlu0 %1200 }
0x11a0   :  { %v1203_v23 = vmul.f32 %v1777_v20, %v1201_v21 }
0x11a2   :  { %1205 = vrot.lane.b32.xlu1 %v1203_v23, %s1813_s25 }
0x1214   :  { %v1206_v26 = vpop.permute.xlu1 %1205 }
0x1215   :  { %v1208_v28 = vadd.f32 %v1206_v26, %v1198_v25 }
0x1217   :  { %1778 = vtanh.f32 %v1208_v28 }
0x1224   :  { %v1779_v29 = vpop.eup %1778 }
0x1225   :  { %1211 = vrot.lane.b32.xlu0 %v1779_v29, %s1812_s1 }
0x1297   :  { %v1212_v30 = vpop.permute.xlu0 %1211 }
0x1298   :  { %v1214_v31 = vmul.f32 %v1777_v20, %v1212_v30 }
0x129a   :  { %1216 = vrot.lane.b32.xlu1 %v1214_v31, %s1813_s25 }
0x130c   :  { %v1217_v32 = vpop.permute.xlu1 %1216 }
0x130d   :  { %1696 = vmatpush3.msk.msra.mxu0 %vm131_vm1, %v1217_v32 }
0x130e   :  { %1698 = vmatmul.mubr.msk.f32.vlgmr.msra.gmra.mxu0 %vm127_vm2, %v1888_v22  ;;  %1700 = vmatprep.subr.mxu0 %v1810_v1 }
0x130f   :  { %1701 = vmatpush3.msra.mxu0 %v1844_v0  ;;  %1708 = vmatprep.mubr.msk.f32.mxu0 %vm1811_vm0, %v1810_v1 }
0x1310   :  { %1702 = vmatprep.subr.mxu0 %v1810_v1 }
0x1311   :  { %1703 = vmatpush3.msra.mxu0 %v1850_v2 }
0x1312   :  { %1704 = vmatprep.subr.mxu0 %v1810_v1 }
0x1313   :  { %1705 = vmatpush3.msra.mxu0 %v1860_v3 }
0x1314   :  { %1706 = vmatprep.subr.mxu0 %v1810_v1 }
0x1315   :  { %1707 = vmatpush3.msra.mxu0 %v1869_v4 }
0x1316   :  { %1709 = vmatmul.mubr.msk.f32.vlgmr.msra.gmra.mxu0 %vm25_vm3, %v1217_v32  ;;  %vm1478_vm3 = vcmask 254976  }
0x13ce   :  { %v2060_v33 = vpop.f32.mrf.mxu0 }
0x13d0   :  { %v1699_v0 = vpop.f32.mrf.mxu0 }
0x13d6   :  { %v1367_v35 = vpop.f32.mrf.mxu0 }
0x13d7   :  { %v1371_v36 = vadd.f32 %v1527_v34, %v1367_v35 }
0x13d8   :  { %v1710_v2 = vpop.f32.mrf.mxu0 }
0x13d9   :  { %1780 = vtanh.f32 %v1371_v36  ;;  %v1529_v3 = vmul.f32 -1.442695, %v1371_v36 }
0x13db   :  { %1782 = vpow2.f32 %v1529_v3 }
0x13e6   :  { %v1781_v37 = vpop.eup %1780 }
0x13e7   :  { %1381 = vrot.lane.b32.xlu0 %v1781_v37, %s1812_s1 }
0x13e8   :  { %v1783_v1 = vpop.eup %1782 }
0x13e9   :  { %v1375_v4 = vadd.f32 1.0, %v1783_v1 }
0x13eb   :  { %1784 = vrcp.f32 %v1375_v4 }
0x13f8   :  { %v1785_v38 = vpop.eup %1784 }
0x13f9   :  { %v1379_v42 = vmul.f32 %v1785_v38, %v1208_v28 }
0x1459   :  { %v1382_v39 = vpop.permute.xlu0 %1381 }
0x145a   :  { %v1384_v40 = vmul.f32 %v1785_v38, %v1382_v39 }
0x145c   :  { %1386 = vrot.lane.b32.xlu1 %v1384_v40, %s1813_s25 }
0x14ce   :  { %v1387_v43 = vpop.permute.xlu1 %1386 }
0x14cf   :  { %v1389_v44 = vadd.f32 %v1387_v43, %v1379_v42 }
0x14d1   :  { %1786 = vtanh.f32 %v1389_v44 }
0x14de   :  { %v1787_v46 = vpop.eup %1786 }
0x14df   :  { %1392 = vrot.lane.b32.xlu0 %v1787_v46, %s1812_s1 }
0x14e3   :  { %207 = vperm.xlu0 %1722, %v205_v48  }
0x14e7   :  { %750 = vperm.xlu0 %1722, %v748_v49  }
0x14eb   :  { %1112 = vperm.xlu0 %1722, %v1110_v50  }
0x14ef   :  { %1474 = vperm.xlu0 %1722, %v1472_v57  }
0x1551   :  { %v1393_v51 = vpop.permute.xlu0 %1392 }
0x1552   :  { %v1395_v52 = vmul.f32 %v1785_v38, %v1393_v51 }
0x1554   :  { %1397 = vrot.lane.b32.xlu1 %v1395_v52, %s1813_s25 }
0x1558   :  { %388 = vperm.xlu1 %1723, %v386_v53  }
0x155c   :  { %569 = vperm.xlu1 %1723, %v567_v54  }
0x155e   :  { %v208_v62 = vpop.permute.xlu0 %207 }
0x155f   :  { %vm209_vm12 = vcmp.eq.s32.totalorder %v208_v62, 1 }
0x1560   :  { %931 = vperm.xlu1 %1723, %v929_v55   ;;  %v210_v7 = vsel %vm209_vm12, %v1915_v24, 0.0 }
0x1562   :  { %v751_v63 = vpop.permute.xlu0 %750 }
0x1563   :  { %vm752_vm15 = vcmp.eq.s32.totalorder %v751_v63, 1 }
0x1564   :  { %1293 = vperm.xlu1 %1723, %v1291_v56  }
0x1566   :  { %v1113_v11 = vpop.permute.xlu0 %1112 }
0x156a   :  { %v1475_v14 = vpop.permute.xlu0 %1474 }
0x156b   :  { %vm1476_vm4 = vcmp.eq.s32.totalorder %v1475_v14, 1 }
0x15c6   :  { %v1398_v58 = vpop.permute.xlu1 %1397 }
0x15c7   :  { %1712 = vmatpush3.msk.msra.mxu1 %vm131_vm1, %v1398_v58  ;;  %vm1114_vm1 = vcmp.eq.s32.totalorder %v1113_v11, 1 }
0x15c8   :  { %1714 = vmatmul.mubr.msk.f32.vlgmr.msra.gmra.mxu1 %vm127_vm2, %v1888_v22 }
0x15d3   :  { %v389_v60 = vpop.permute.xlu1 %388 }
0x15d4   :  { %vm390_vm13 = vcmp.eq.s32.totalorder %v389_v60, 1 }
0x15d5   :  { %v391_v8 = vsel %vm390_vm13, %v1939_v59, %v210_v7 }
0x15d7   :  { %v570_v61 = vpop.permute.xlu1 %569 }
0x15d8   :  { %vm571_vm14 = vcmp.eq.s32.totalorder %v570_v61, 1 }
0x15d9   :  { %v572_v9 = vsel %vm571_vm14, %v1959_v5, %v391_v8 }
0x15da   :  { %v753_v22 = vsel %vm752_vm15, %v1985_v27, %v572_v9 }
0x15db   :  { %v932_v6 = vpop.permute.xlu1 %931 }
0x15dc   :  { %vm933_vm0 = vcmp.eq.s32.totalorder %v932_v6, 1 }
0x15dd   :  { %v934_v13 = vsel %vm933_vm0, %v2011_v47, %v753_v22 }
0x15de   :  { %v1115_v15 = vsel %vm1114_vm1, %v2037_v10, %v934_v13 }
0x15df   :  { %v1294_v12 = vpop.permute.xlu1 %1293 }
0x15e0   :  { %vm1295_vm2 = vcmp.eq.s32.totalorder %v1294_v12, 1 }
0x15e1   :  { %v1296_v24 = vsel %vm1295_vm2, %v2060_v33, %v1115_v15 }
0x1688   :  { %v1467_v59 = vpop.f32.mrf.mxu1 }
0x1689   :  { %v1477_v5 = vsel %vm1476_vm4, %v1467_v59, %v1296_v24 }
0x168a   :  { %v1715_v16 = vpop.f32.mrf.mxu1  ;;  %1479 = vst.msk [vmem:[#allocation2] sm:$0x3] %vm1478_vm3, %v1477_v5 }
0x168b   :  { %1799 = shalt.err (!%p1796_p4)
}
0x168c   :  { %1489 = dma.vmem_to_hbm [thread:$0]  %s1487_s16, 32, %s2089_s4, [#allocation3]  }
0x168d   :  { %1808 = dma.done.wait [#allocation3], 32  }
0x168e   :  { %1809 = vsyncadd [#allocation3], 4294967264 }
0x168f   :  { %1493 = vsyncpa [#allocation3], 1 }

</bundles_post_ra>
